<compile_context>
chip_gen: v7x
topology: tpu7x:2x2x1
jax: 0.10.0
libtpu: 0.0.40
codegen_flags: <defaults>
</compile_context>

<pallas_src>
import functools

import jax
import jax.numpy as jnp
from jax import lax
from jax.experimental import pallas as pl
from jax.experimental.pallas import tpu as pltpu


def _round_up(x, m):
    return (x + m - 1) // m * m


def _make_kernel(gamma: float, use_bf16_matmul: bool):
    two_gamma = 2.0 * float(gamma)
    g = float(gamma)

    def kernel(x_ref, gcc_ref, c_ref, w_ref, o_ref, gxx_ref):
        # grid = (M tiles, N tiles); axis 1 is the reduction over centers.
        k = pl.program_id(1)

        x = x_ref[...].astype(jnp.float32)        # (tm, D), resident across k

        @pl.when(k == 0)
        def _():
            # Hoisted per-i work: gamma*||x||^2 and accumulator init.
            gxx_ref[...] = g * jnp.sum(x * x, axis=-1, keepdims=True)  # (tm, 1)
            o_ref[...] = jnp.zeros_like(o_ref)

        c = c_ref[...].astype(jnp.float32)        # (tn, D)

        if use_bf16_matmul:
            # v6e/v7x: native bf16 MXU; accumulation stays f32.
            xc = lax.dot_general(
                x.astype(jnp.bfloat16), c.astype(jnp.bfloat16),
                (((1,), (1,)), ((), ())),
                preferred_element_type=jnp.float32)            # (tm, tn)
        else:
            # Contract last dims of both operands (transposed-RHS matmul, no
            # materialized transpose of the centers tile).
            xc = lax.dot_general(
                x, c, (((1,), (1,)), ((), ())),
                preferred_element_type=jnp.float32)            # (tm, tn)

        # arg = -gamma * d2 = 2*gamma*x.c - gamma*||x||^2 - gamma*||c||^2
        arg = two_gamma * xc - gxx_ref[...] - gcc_ref[...]     # (tm, tn)
        kmat = jnp.exp(jnp.minimum(arg, 0.0))                  # clamp: d2 >= 0

        w = w_ref[...].astype(jnp.float32)                     # (tn, Y)
        if use_bf16_matmul:
            o_ref[...] += jnp.dot(kmat.astype(jnp.bfloat16),
                                  w.astype(jnp.bfloat16),
                                  preferred_element_type=jnp.float32)
        else:
            o_ref[...] += jnp.dot(kmat, w,
                                  preferred_element_type=jnp.float32)

    return kernel


def kernel_model_forward(batch, centers, weight, gamma=0.5, tm=None, tn=None,
                         use_bf16_matmul=False):
    """pred = exp(-gamma * ||batch_i - centers_j||^2) @ weight   -> (M, Y)."""
    M, D = batch.shape
    N, Dc = centers.shape
    assert D == Dc
    Nw, Y = weight.shape
    assert Nw == N

    f32 = jnp.float32

    # --- tile selection -----------------------------------------------------
    # tm: multiple of 8, capped at 256 so large batches fit v7x's 64 MiB VMEM
    # and leave >=2 i-tiles for megacore sharding of the "parallel" axis.
    if tm is None:
        tm = min(256, _round_up(M, 8))
    else:
        tm = min(_round_up(int(tm), 8), _round_up(M, 8))

    # tn: multiple of 128 (lane constraint of the (1, tn) norms block), as
    # large as a ~10 MiB double-buffer budget allows (<= 1024).  Budget keeps
    # the whole pipeline under the smallest scoped-VMEM default (16 MiB, v5e).
    y_lanes = _round_up(Y, 128)                  # weight tile lane padding
    per_col_bytes = 4 * (D + y_lanes) + 32       # centers + weight + gcc cols
    budget = 10 * 1024 * 1024
    tn_cap = max(128, (budget // (2 * per_col_bytes)) // 128 * 128)
    if tn is None:
        tn = min(1024, tn_cap, _round_up(N, 128))
    else:
        tn = min(_round_up(int(tn), 128), _round_up(N, 128))

    # --- zero-pad ragged M / N (exact: padded weight rows are zero) ---------
    Mp = _round_up(M, tm)
    Np = _round_up(N, tn)

    batch_p = batch if Mp == M else jnp.pad(batch, ((0, Mp - M), (0, 0)))
    if Np == N:
        centers_p, weight_p = centers, weight
    else:
        centers_p = jnp.pad(centers, ((0, Np - N), (0, 0)))
        weight_p = jnp.pad(weight, ((0, Np - N), (0, 0)))

    # Precompute gamma*||c||^2 once on the host side: (1, Np) f32.  Removes a
    # per-step sublane->lane transpose + reduction from the kernel body.
    gcc = (float(gamma)
           * jnp.sum(centers_p.astype(f32) ** 2, axis=-1)).reshape(1, Np)

    grid = (Mp // tm, Np // tn)
    kernel = _make_kernel(float(gamma), bool(use_bf16_matmul))

    out = pl.pallas_call(
        kernel,
        out_shape=jax.ShapeDtypeStruct((Mp, Y), f32),
        grid_spec=pltpu.PrefetchScalarGridSpec(
            num_scalar_prefetch=0,
            grid=grid,
            in_specs=[
                pl.BlockSpec((tm, D), lambda i, k: (i, 0)),   # batch tile
                pl.BlockSpec((1, tn), lambda i, k: (0, k)),   # gamma*||c||^2
                pl.BlockSpec((tn, D), lambda i, k: (k, 0)),   # centers tile
                pl.BlockSpec((tn, Y), lambda i, k: (k, 0)),   # weight tile
            ],
            # Output block index constant over k -> VMEM-resident accumulator
            # across the whole reduction.
            out_specs=pl.BlockSpec((tm, Y), lambda i, k: (i, 0)),
            scratch_shapes=[pltpu.VMEM((tm, 1), f32)],        # gamma*||x||^2
        ),
        compiler_params=pltpu.CompilerParams(
            dimension_semantics=("parallel", "arbitrary"),
        ),
    )(batch_p, gcc, centers_p, weight_p)

    return out[:M] if Mp != M else out


def _reference_forward(batch, centers, weight, gamma=0.5):
    batch = batch.astype(jnp.float32)
    centers = centers.astype(jnp.float32)
    weight = weight.astype(jnp.float32)
    d2 = (
        jnp.sum(batch * batch, axis=-1, keepdims=True)
        + jnp.sum(centers * centers, axis=-1)[None, :]
        - 2.0 * batch @ centers.T
    )
    d2 = jnp.maximum(d2, 0.0)
    kmat = jnp.exp(-gamma * d2)
    return kmat @ weight


if __name__ == "__main__":
    # Small, deterministic shapes consistent with KernelModel:
    #   centers: (n_centers, x_dim), weight: (n_centers, y_dim), batch: (M, x_dim)
    gamma = 0.5
    key = jax.random.PRNGKey(0)

    # --- test 1: aligned shapes, forced small tiles (multi-tile grid) -------
    M, D, N, Y = 32, 16, 512, 8
    k1, k2, k3 = jax.random.split(key, 3)
    batch = jax.random.normal(k1, (M, D), dtype=jnp.float32)
    centers = jax.random.normal(k2, (N, D), dtype=jnp.float32)
    # Module initializes weight to zeros; use nonzero values to exercise matmul.
    weight = jax.random.normal(k3, (N, Y), dtype=jnp.float32) * 0.1

    fwd = functools.partial(kernel_model_forward, gamma=gamma, tm=16, tn=128)
    pred = jax.block_until_ready(fwd(batch, centers, weight))
    ref = _reference_forward(batch, centers, weight, gamma=gamma)
    assert pred.shape == (M, Y)
    assert jnp.allclose(pred, ref, atol=1e-4, rtol=1e-4), "mismatch (tiled)"

    # --- test 2: default (auto) tiling path ----------------------------------
    pred2 = jax.block_until_ready(
        kernel_model_forward(batch, centers, weight, gamma=gamma))
    assert jnp.allclose(pred2, ref, atol=1e-4, rtol=1e-4), "mismatch (default)"

    # --- test 3: ragged M / N exercises the zero-padding path ---------------
    M3, N3, Y3 = 30, 300, 5
    k4, k5, k6 = jax.random.split(jax.random.PRNGKey(0), 3)
    batch3 = jax.random.normal(k4, (M3, D), dtype=jnp.float32)
    centers3 = jax.random.normal(k5, (N3, D), dtype=jnp.float32)
    weight3 = jax.random.normal(k6, (N3, Y3), dtype=jnp.float32) * 0.1
    pred3 = jax.block_until_ready(
        kernel_model_forward(batch3, centers3, weight3, gamma=gamma))
    ref3 = _reference_forward(batch3, centers3, weight3, gamma=gamma)
    assert pred3.shape == (M3, Y3)
    assert jnp.allclose(pred3, ref3, atol=1e-4, rtol=1e-4), "mismatch (ragged)"

    # TODO(synk): training-time methods (nmf_iterate / asm_nmf_fn / fit /
    # evaluate) are iterative host-side optimization loops, not part of
    # forward(); only the forward hot path is implemented as a Pallas kernel.
    print("KERNEL_OK")
</pallas_src>

<mosaic_0001>
module attributes {stable_mosaic.version = 11 : i64} {
  func.func @kernel(%arg0: i32, %arg1: i32, %arg2: memref<16x16xf32, #tpu.memory_space<vmem>>, %arg3: memref<1x128xf32, #tpu.memory_space<vmem>>, %arg4: memref<128x16xf32, #tpu.memory_space<vmem>>, %arg5: memref<128x8xf32, #tpu.memory_space<vmem>>, %arg6: memref<16x8xf32, #tpu.memory_space<vmem>>, %arg7: memref<16x1xf32, #tpu.memory_space<vmem>>) attributes {dimension_semantics = [#tpu.dimension_semantics<parallel>, #tpu.dimension_semantics<arbitrary>], iteration_bounds = array<i64: 2, 4>, scalar_prefetch = 0 : i64, scratch_operands = 1 : i64, tpu.core_type = #tpu.core_type<tc>, window_params = [{transform_indices = @transform_0, window_bounds = array<i64: 16, 16>}, {transform_indices = @transform_1, window_bounds = array<i64: 1, 128>}, {transform_indices = @transform_2, window_bounds = array<i64: 128, 16>}, {transform_indices = @transform_3, window_bounds = array<i64: 128, 8>}, {transform_indices = @transform_4, window_bounds = array<i64: 16, 8>}]} {
    %c0 = arith.constant 0 : index
    %c0_0 = arith.constant 0 : index
    %0 = vector.load %arg2[%c0, %c0_0] : memref<16x16xf32, #tpu.memory_space<vmem>>, vector<16x16xf32>
    %c0_i32 = arith.constant 0 : i32
    %1 = arith.cmpi eq, %arg1, %c0_i32 : i32
    %2 = arith.extui %1 : i1 to i32
    %c0_i32_1 = arith.constant 0 : i32
    %3 = arith.cmpi ne, %2, %c0_i32_1 : i32
    scf.if %3 {
      %22 = arith.mulf %0, %0 : vector<16x16xf32>
      %cst_17 = arith.constant dense<0.000000e+00> : vector<16xf32>
      %23 = vector.multi_reduction <add>, %22, %cst_17 [1] : vector<16x16xf32> to vector<16xf32>
      %24 = vector.shape_cast %23 : vector<16xf32> to vector<16x1xf32>
      %cst_18 = arith.constant 5.000000e-01 : f32
      %25 = vector.broadcast %cst_18 : f32 to vector<16x1xf32>
      %26 = arith.mulf %25, %24 : vector<16x1xf32>
      %c0_19 = arith.constant 0 : index
      %c0_20 = arith.constant 0 : index
      %27 = vector.load %arg7[%c0_19, %c0_20] : memref<16x1xf32, #tpu.memory_space<vmem>>, vector<16x1xf32>
      tpu.vector_store %arg7[%c0_19, %c0_20], %26 {strides = array<i32>} : memref<16x1xf32, #tpu.memory_space<vmem>>, vector<16x1xf32>,
      %cst_21 = arith.constant 0.000000e+00 : f32
      %28 = vector.broadcast %cst_21 : f32 to vector<16x8xf32>
      %c0_22 = arith.constant 0 : index
      %c0_23 = arith.constant 0 : index
      %29 = vector.load %arg6[%c0_22, %c0_23] : memref<16x8xf32, #tpu.memory_space<vmem>>, vector<16x8xf32>
      tpu.vector_store %arg6[%c0_22, %c0_23], %28 {strides = array<i32>} : memref<16x8xf32, #tpu.memory_space<vmem>>, vector<16x8xf32>,
    } else {
    }
    %c0_2 = arith.constant 0 : index
    %c0_3 = arith.constant 0 : index
    %4 = vector.load %arg4[%c0_2, %c0_3] : memref<128x16xf32, #tpu.memory_space<vmem>>, vector<128x16xf32>
    %cst = arith.constant dense<0.000000e+00> : vector<16x128xf32>
    %5 = tpu.matmul %0, %4, %cst {dimension_numbers = #tpu.dot_dimension_numbers<[1], [1], [0], [0], [0, 0, 1, 0], [], []>} : vector<16x16xf32>, vector<128x16xf32>, vector<16x128xf32> -> vector<16x128xf32>
    %cst_4 = arith.constant 1.000000e+00 : f32
    %6 = vector.broadcast %cst_4 : f32 to vector<16x128xf32>
    %7 = arith.mulf %6, %5 : vector<16x128xf32>
    %c0_5 = arith.constant 0 : index
    %c0_6 = arith.constant 0 : index
    %8 = vector.load %arg7[%c0_5, %c0_6] : memref<16x1xf32, #tpu.memory_space<vmem>>, vector<16x1xf32>
    %9 = vector.broadcast %8 : vector<16x1xf32> to vector<16x128xf32>
    %10 = arith.subf %7, %9 : vector<16x128xf32>
    %c0_7 = arith.constant 0 : index
    %c0_8 = arith.constant 0 : index
    %11 = vector.load %arg3[%c0_7, %c0_8] : memref<1x128xf32, #tpu.memory_space<vmem>>, vector<1x128xf32>
    %12 = vector.broadcast %11 : vector<1x128xf32> to vector<16x128xf32>
    %13 = arith.subf %10, %12 : vector<16x128xf32>
    %cst_9 = arith.constant 0.000000e+00 : f32
    %14 = vector.broadcast %cst_9 : f32 to vector<16x128xf32>
    %15 = arith.minimumf %13, %14 : vector<16x128xf32>
    %16 = math.exp %15 : vector<16x128xf32>
    %c0_10 = arith.constant 0 : index
    %c0_11 = arith.constant 0 : index
    %17 = vector.load %arg5[%c0_10, %c0_11] : memref<128x8xf32, #tpu.memory_space<vmem>>, vector<128x8xf32>
    %c0_12 = arith.constant 0 : index
    %c0_13 = arith.constant 0 : index
    %18 = vector.load %arg6[%c0_12, %c0_13] : memref<16x8xf32, #tpu.memory_space<vmem>>, vector<16x8xf32>
    %cst_14 = arith.constant dense<0.000000e+00> : vector<16x8xf32>
    %19 = tpu.matmul %16, %17, %cst_14 {dimension_numbers = #tpu.dot_dimension_numbers<[1], [0], [0], [1], [0, 0, 1, 1], [], []>} : vector<16x128xf32>, vector<128x8xf32>, vector<16x8xf32> -> vector<16x8xf32>
    %20 = arith.addf %18, %19 : vector<16x8xf32>
    %c0_15 = arith.constant 0 : index
    %c0_16 = arith.constant 0 : index
    %21 = vector.load %arg6[%c0_15, %c0_16] : memref<16x8xf32, #tpu.memory_space<vmem>>, vector<16x8xf32>
    tpu.vector_store %arg6[%c0_15, %c0_16], %20 {strides = array<i32>} : memref<16x8xf32, #tpu.memory_space<vmem>>, vector<16x8xf32>,
    return
  }
  func.func @transform_0(%arg0: i32, %arg1: i32) -> (i32, i32) {
    %c0_i32 = arith.constant 0 : i32
    %c0_i32_0 = arith.constant 0 : i32
    return %arg0, %c0_i32 : i32, i32
  }
  func.func @transform_1(%arg0: i32, %arg1: i32) -> (i32, i32) {
    %c0_i32 = arith.constant 0 : i32
    %c0_i32_0 = arith.constant 0 : i32
    return %c0_i32, %arg1 : i32, i32
  }
  func.func @transform_2(%arg0: i32, %arg1: i32) -> (i32, i32) {
    %c0_i32 = arith.constant 0 : i32
    %c0_i32_0 = arith.constant 0 : i32
    return %arg1, %c0_i32 : i32, i32
  }
  func.func @transform_3(%arg0: i32, %arg1: i32) -> (i32, i32) {
    %c0_i32 = arith.constant 0 : i32
    %c0_i32_0 = arith.constant 0 : i32
    return %arg1, %c0_i32 : i32, i32
  }
  func.func @transform_4(%arg0: i32, %arg1: i32) -> (i32, i32) {
    %c0_i32 = arith.constant 0 : i32
    %c0_i32_0 = arith.constant 0 : i32
    return %arg0, %c0_i32 : i32, i32
  }
}

</mosaic_0001>

<bundles_post_ra>
// kernel: tpu_custom_call.1
= control target key start
LH: loop header
LB: loop body
LE: loop exit
PB: predicated region body
PF: predicated region fallthrough
CT: control target
= control target key end

     0   :  { %s1003_s15 = smov 0   ;;  %s1005_s16 = smov 0   ;;  %s1166_s0 = inlined_call_operand.vmem [shape: f32[32,16], index: 0, kind: input, shape index: {}]   ;;  %s1167_s1 = inlined_call_operand.vmem [shape: f32[1,512], index: 1, kind: input, shape index: {}]   ;;  %s1168_s2 = inlined_call_operand.vmem [shape: f32[512,16], index: 2, kind: input, shape index: {}]   ;;  %s1169_s3 = inlined_call_operand.vmem [shape: f32[512,8], index: 3, kind: input, shape index: {}]   ;;  %s1170_s4 = inlined_call_operand.vmem [shape: f32[32,8], index: 4, kind: output, shape index: {}]  }
   0x1   :  { %s1007_s17 = smov 0   ;;  %s1009_s18 = smov 0  }
   0x2   :  { %s1011_s19 = smov 0  }
   0x3 LB: > { %s23_s20 = sadd.s32 1, %s966_s17  ;;  %s26_s21 = sadd.s32 1, %s970_s18  ;;  %s974_s19 = sphi %s1011_s19, %s14_s19   ;;  %s970_s18 = sphi %s1009_s18, %s1176_s18   ;;  %s966_s17 = sphi %s1007_s17, %s1175_s17   ;;  %s962_s16 = sphi %s1005_s16, %s1174_s16   ;;  %s958_s15 = sphi %s1003_s15, %s1173_s15  }
   0x4   : > { %p24_p0 = scmp.ge.s32.totalorder %s23_s20, 4  ;;  %p672_p1 = scmp.ge.s32.totalorder %s974_s19, 1 }
   0x5   : > { %p205_p2 = scmp.lt.s32.totalorder %s974_s19, 9 }
   0x6   : > { %s1178_s20 = smov (%p24_p0, %s23_s20), 0  ;;  %s1180_s21 = smov (!%p24_p0, %s26_s21), %s970_s18 }
   0x7   : > { %p206_p3 = pnand %p672_p1, %p205_p2  ;;  %p28_p4 = scmp.ge.s32.totalorder %s1180_s21, 2 }
   0x8   : > { %s673_s22 = sshll.u32 (!%p206_p3), %s962_s16, 1  ;;  %p250_p5 = scmp.lt.s32.totalorder (!%p206_p3), %s958_s15, 3 }
   0x9   : > { %s1182_s21 = smov (%p28_p4, %s1180_s21), 0  ;;  %209 = sbr.rel (%p206_p3) target bundleno = 689 (0x2b1), region = 36 }
   0xa   : > { %p245_p6 = scmp.lt.s32.totalorder (!%p206_p3), %s673_s22, 3  ;;  %s675_s23 = sshll.u32 (!%p206_p3), %s958_s15, 4 }
   0xb   : > { %p254_p7 = scmp.lt.s32.totalorder (!%p206_p3), %s675_s23, 63  ;;  %p681_p8 = scmp.ne.s32.totalorder (!%p206_p3), %s958_s15, 0 }
  0x10   : > { %s1038_s24 = scalar_select %p250_p5, %s958_s15, 3 }
  0x11   : > { %s1184_s22 = smov (!%p245_p6, %s673_s22), 3  ;;  %s1186_s23 = smov (!%p254_p7, %s675_s23), 63 }
  0x12   : > { %s252_s27 = scalar_lea.vmem %s1167_s1, %s1038_s24  ;;  %s674_s28 = sshll.u32 %s1184_s22, 3  ;;  %vm279_vm0 = vcmask (!%p681_p8), 130048   ;;  %vm291_vm1 = vcmask (!%p681_p8), 64512   ;;  %v976_v6 = vmov (!%p681_p8), 0.0   ;;  %vm288_vm2 = vcmask (!%p681_p8), 7168  }
  0x13   : > { %s248_s5 = scalar_lea.vmem %s1166_s0, %s674_s28  ;;  %s1050_s8 = scalar_lea.vmem %s1170_s4, %s674_s28 }
  0x14   : > { %v271_v0 = vld [vmem:[%s248_s5] sm:$0xff]  ;;  %v1052_v1 = vld [vmem:[%s248_s5 + $0x8] sm:$0xff]  ;;  %s676_s9 = sshll.u32 %s1186_s23, 3  ;;  %276 = sbr.rel (%p681_p8) target bundleno = 173 (0xad), region = 40  ;;  %292 = vst.msk [vmem:[%s1050_s8] sm:$0xff] (!%p681_p8), %vm291_vm1, %v976_v6  ;;  %293 = vst.msk [vmem:[%s1050_s8 + $0x8] sm:$0xff] (!%p681_p8), %vm291_vm1, %v976_v6 }
  0x15   : > { %s1057_s12 = scalar_lea.vmem %s1168_s2, %s676_s9  ;;  %s1062_s16 = scalar_lea.vmem %s1169_s3, %s676_s9  ;;  %v277_v2 = vmul.f32 (!%p681_p8), %v271_v0, %v271_v0  ;;  %v278_v3 = vmul.f32 (!%p681_p8), %v1052_v1, %v1052_v1 }
  0x17   : > { %v280_v4 = vsel (!%p681_p8), %vm279_vm0, %v277_v2, 0.0  ;;  %v283_v5 = vsel (!%p681_p8), %vm279_vm0, %v278_v3, 0.0 }
  0x18   : > { %281 = vadd.xlane.f32.xlu0 (!%p681_p8), %v280_v4 }
  0x1c   : > { %284 = vadd.xlane.f32.xlu0 %v283_v5 }
  0xa5   : > { %v282_v7 = vpop.xlane.xlu0 %281 }
  0xa6   : > { %v286_v8 = vmul.f32 0.5, %v282_v7 }
  0xa8   : > { %289 = vst.msk [vmem:[#allocation2] sm:$0xff] %vm288_vm2, %v286_v8 }
  0xa9   : > { %v285_v9 = vpop.xlane.xlu0 %284 }
  0xaa   : > { %v287_v10 = vmul.f32 0.5, %v285_v9 }
  0xac   : > { %290 = vst.msk [vmem:[#allocation2 + $0x8] sm:$0xff] %vm288_vm2, %v287_v10 }
  0xad PF: > { %v294_v11 = vld [vmem:[%s1057_s12] sm:$0xff]  ;;  %v295_v12 = vld [vmem:[%s1057_s12 + $0x8] sm:$0xff]  ;;  %vm310_vm3 = vcmask 130048   ;;  %v296_v13 = vld [vmem:[%s1057_s12 + $0x10] sm:$0xff]  ;;  %v977_v17 = vmov 0   ;;  %vm564_vm5 = vcmask 64512  }
  0xae   : > { %v809_v14 = vpack.c.bf16 %v295_v12, %v294_v11  ;;  %vm1074_vm4 = vmpackc.low %vm310_vm3, %vm310_vm3  ;;  %v297_v16 = vld [vmem:[%s1057_s12 + $0x18] sm:$0xff]  ;;  %771 = vmatprep.mubr.msk.f32.mxu0 %vm310_vm3, %v271_v0  ;;  %931 = vset.pattern.permute.xlu0 %v977_v17  ;;  %v298_v19 = vld [vmem:[%s1057_s12 + $0x20] sm:$0xff] }
  0xaf   : > { %v815_v18 = vpack.c.bf16 %v297_v16, %v296_v13  ;;  %v440_v20 = vld [vmem:[#allocation2] sm:$0xff]  ;;  %v299_v21 = vld [vmem:[%s1057_s12 + $0x28] sm:$0xff]  ;;  %v471_v26 = vld [vmem:[%s1062_s16 + $0x10] sm:$0xff] }
  0xb0   : > { %811 = vmatprep.subr.msk.bf16.mxu0 %vm1074_vm4, %v809_v14  ;;  %444 = vperm.xlu0 %931, %v440_v20   ;;  %v469_v22 = vld [vmem:[%s1062_s16] sm:$0xff]  ;;  %v470_v23 = vld [vmem:[%s1062_s16 + $0x8] sm:$0xff]  ;;  %v472_v27 = vld [vmem:[%s1062_s16 + $0x18] sm:$0xff]  ;;  %v821_v31 = vpack.c.bf16 %v299_v21, %v298_v19 }
  0xb1   : > { %814 = vmatpush3.bf16.xpose.msk.msra.mxu0 %vm1074_vm4, %v809_v14  ;;  %v857_v25 = vpack.c.bf16 %v470_v23, %v469_v22  ;;  %v861_v28 = vpack.c.bf16 %v472_v27, %v471_v26  ;;  %v473_v29 = vld [vmem:[%s1062_s16 + $0x20] sm:$0xff]  ;;  %v474_v30 = vld [vmem:[%s1062_s16 + $0x28] sm:$0xff]  ;;  %v300_v33 = vld [vmem:[%s1057_s12 + $0x30] sm:$0xff] }
  0xb2   : > { %817 = vmatprep.subr.msk.bf16.mxu0 %vm1074_vm4, %v815_v18  ;;  %v865_v32 = vpack.c.bf16 %v474_v30, %v473_v29  ;;  %v301_v34 = vld [vmem:[%s1057_s12 + $0x38] sm:$0xff]  ;;  %v302_v36 = vld [vmem:[%s1057_s12 + $0x40] sm:$0xff]  ;;  %v303_v37 = vld [vmem:[%s1057_s12 + $0x48] sm:$0xff] }
  0xb3   : > { %v441_v24 = vld [vmem:[#allocation2 + $0x8] sm:$0xff]  ;;  %858 = vmatprep.subr.bf16.mxu1 %v857_v25  ;;  %v827_v35 = vpack.c.bf16 %v301_v34, %v300_v33  ;;  %v833_v38 = vpack.c.bf16 %v303_v37, %v302_v36  ;;  %v304_v39 = vld [vmem:[%s1057_s12 + $0x50] sm:$0xff]  ;;  %v305_v40 = vld [vmem:[%s1057_s12 + $0x58] sm:$0xff] }
  0xb4   : > { %449 = vperm.xlu0 %931, %v441_v24   ;;  %860 = vmatpush3.bf16.msra.mxu1 %v857_v25  ;;  %v839_v41 = vpack.c.bf16 %v305_v40, %v304_v39  ;;  %v306_v42 = vld [vmem:[%s1057_s12 + $0x60] sm:$0xff]  ;;  %v307_v43 = vld [vmem:[%s1057_s12 + $0x68] sm:$0xff]  ;;  %v308_v45 = vld [vmem:[%s1057_s12 + $0x70] sm:$0xff] }
  0xb5   : > { %862 = vmatprep.subr.bf16.mxu1 %v861_v28  ;;  %v845_v44 = vpack.c.bf16 %v307_v43, %v306_v42  ;;  %v309_v46 = vld [vmem:[%s1057_s12 + $0x78] sm:$0xff]  ;;  %v475_v48 = vld [vmem:[%s1062_s16 + $0x30] sm:$0xff]  ;;  %v477_v51 = vld [vmem:[%s1062_s16 + $0x40] sm:$0xff] }
  0xb6   : > { %v851_v47 = vpack.c.bf16 %v309_v46, %v308_v45  ;;  %v476_v49 = vld [vmem:[%s1062_s16 + $0x38] sm:$0xff]  ;;  %v478_v52 = vld [vmem:[%s1062_s16 + $0x48] sm:$0xff]  ;;  %v479_v54 = vld [vmem:[%s1062_s16 + $0x50] sm:$0xff] }
  0xb7   : > { %v869_v50 = vpack.c.bf16 %v476_v49, %v475_v48  ;;  %v873_v53 = vpack.c.bf16 %v478_v52, %v477_v51  ;;  %v480_v55 = vld [vmem:[%s1062_s16 + $0x58] sm:$0xff]  ;;  %v481_v57 = vld [vmem:[%s1062_s16 + $0x60] sm:$0xff]  ;;  %v482_v58 = vld [vmem:[%s1062_s16 + $0x68] sm:$0xff] }
  0xb8   : > { %864 = vmatpush3.bf16.msra.mxu1 %v861_v28  ;;  %v877_v56 = vpack.c.bf16 %v480_v55, %v479_v54  ;;  %v483_v59 = vld [vmem:[%s1062_s16 + $0x70] sm:$0xff]  ;;  %v881_v60 = vpack.c.bf16 %v482_v58, %v481_v57  ;;  %v484_v61 = vld [vmem:[%s1062_s16 + $0x78] sm:$0xff]  ;;  %v700_v2 = vld [vmem:[%s252_s27] ss:$0 sm:$0xff] }
  0xb9   : > { %820 = vmatpush3.bf16.xpose.msk.msra.mxu0 %vm1074_vm4, %v815_v18  ;;  %866 = vmatprep.subr.bf16.mxu1 %v865_v32  ;;  %v885_v62 = vpack.c.bf16 %v484_v61, %v483_v59  ;;  %v485_v14 = vld [vmem:[%s1050_s8] sm:$0xff]  ;;  %v486_v15 = vld [vmem:[%s1050_s8 + $0x8] sm:$0xff] }
  0xba   : > { %823 = vmatprep.subr.msk.bf16.mxu0 %vm1074_vm4, %v821_v31 }
  0xbc   : > { %868 = vmatpush3.bf16.msra.mxu1 %v865_v32 }
  0xbd   : > { %870 = vmatprep.subr.bf16.mxu1 %v869_v50 }
  0xc0   : > { %872 = vmatpush3.bf16.msra.mxu1 %v869_v50 }
  0xc1   : > { %826 = vmatpush3.bf16.xpose.msk.msra.mxu0 %vm1074_vm4, %v821_v31  ;;  %874 = vmatprep.subr.bf16.mxu1 %v873_v53 }
  0xc2   : > { %829 = vmatprep.subr.msk.bf16.mxu0 %vm1074_vm4, %v827_v35 }
  0xc4   : > { %876 = vmatpush3.bf16.msra.mxu1 %v873_v53 }
  0xc5   : > { %878 = vmatprep.subr.bf16.mxu1 %v877_v56 }
  0xc8   : > { %880 = vmatpush3.bf16.msra.mxu1 %v877_v56 }
  0xc9   : > { %832 = vmatpush3.bf16.xpose.msk.msra.mxu0 %vm1074_vm4, %v827_v35  ;;  %882 = vmatprep.subr.bf16.mxu1 %v881_v60 }
  0xca   : > { %835 = vmatprep.subr.msk.bf16.mxu0 %vm1074_vm4, %v833_v38 }
  0xcc   : > { %884 = vmatpush3.bf16.msra.mxu1 %v881_v60 }
  0xcd   : > { %886 = vmatprep.subr.bf16.mxu1 %v885_v62 }
  0xd0   : > { %888 = vmatpush3.bf16.msra.mxu1 %v885_v62 }
  0xd1   : > { %838 = vmatpush3.bf16.xpose.msk.msra.mxu0 %vm1074_vm4, %v833_v38 }
  0xd2   : > { %841 = vmatprep.subr.msk.bf16.mxu0 %vm1074_vm4, %v839_v41 }
  0xd9   : > { %844 = vmatpush3.bf16.xpose.msk.msra.mxu0 %vm1074_vm4, %v839_v41 }
  0xda   : > { %847 = vmatprep.subr.msk.bf16.mxu0 %vm1074_vm4, %v845_v44 }
  0xe1   : > { %850 = vmatpush3.bf16.xpose.msk.msra.mxu0 %vm1074_vm4, %v845_v44 }
  0xe2   : > { %853 = vmatprep.subr.msk.bf16.mxu0 %vm1074_vm4, %v851_v47 }
  0xe9   : > { %856 = vmatpush3.bf16.xpose.msk.msra.mxu0 %vm1074_vm4, %v851_v47 }
  0xf0   : > { %772 = vmatmul.mubr.msk.f32.vlgmr.msra.gmra.mrb[0].mxu0 %vm310_vm3, %v1052_v1 }
 0x12f   : > { %v445_v63 = vpop.permute.xlu0 %444 }
 0x133   : > { %v450_v0 = vpop.permute.xlu0 %449 }
 0x1c3   : > { %v773_v1 = vpop.f32.mrb[0].mxu0 }
 0x1c4   : > { %v453_v3 = vsub.f32 %v773_v1, %v450_v0  ;;  %v431_v4 = vpop.f32.mrb[1].mxu0 }
 0x1c5   : > { %v452_v5 = vsub.f32 %v431_v4, %v445_v63 }
 0x1c6   : > { %v462_v6 = vsub.f32 %v453_v3, %v700_v2 }
 0x1c7   : > { %v461_v7 = vsub.f32 %v452_v5, %v700_v2 }
 0x1c8   : > { %v464_v8 = vmin.f32 %v462_v6, 0.0 }
 0x1c9   : > { %v463_v9 = vmin.f32 %v461_v7, 0.0 }
 0x1ca   : > { %v467_v10 = vmul.f32 1.442695, %v464_v8 }
 0x1cb   : > { %v465_v11 = vmul.f32 1.442695, %v463_v9 }
 0x1cd   : > { %932 = vpow2.f32 %v465_v11 }
 0x1ce   : > { %934 = vpow2.f32 %v467_v10 }
 0x1d7   : > { %v933_v12 = vpop.eup %932 }
 0x1d8   : > { %v935_v13 = vpop.eup %934  ;;  %806 = vmatprep.mubr.f32.mxu1 %v933_v12 }
 0x1d9   : > { %807 = vmatmul.mubr.f32.vlgmr.msra.gmra.mrb[0].mxu1 %v935_v13 }
 0x2ac   : > { %v808_v16 = vpop.f32.mrb[0].mxu1 }
 0x2ad   : > { %v553_v17 = vpop.f32.mrb[1].mxu1  ;;  %v563_v19 = vadd.f32 %v808_v16, %v486_v15 }
 0x2ae   : > { %v562_v18 = vadd.f32 %v553_v17, %v485_v14 }
 0x2af   : > { %566 = vst.msk [vmem:[%s1050_s8 + $0x8] sm:$0xff] %vm564_vm5, %v563_v19 }
 0x2b0   : > { %565 = vst.msk [vmem:[%s1050_s8] sm:$0xff] %vm564_vm5, %v562_v18 }
 0x2b1 PF: > { %s14_s19 = sadd.s32 1, %s974_s19   ;;  %s1173_s15 = smov %s966_s17 }
 0x2b2   : > { %p11_p9 = scmp.ge.s32.totalorder %s14_s19, 10   ;;  %s1174_s16 = smov %s970_s18 }
 0x2b3   : > { %s1175_s17 = smov %s1178_s20  ;;  %s1176_s18 = smov %s1182_s21 }
 0x2b4   :  { %13 = sbr.rel (!%p11_p9) target bundleno = 3 (0x3), region = 79 }

</bundles_post_ra>
